<compile_context>
chip_gen: v7x
topology: tpu7x:2x2x1
jax: 0.10.0
libtpu: 0.0.40
codegen_flags: <defaults>
</compile_context>

<pallas_src>
import functools

import jax
import jax.numpy as jnp
from jax import lax
from jax.experimental import pallas as pl
from jax.experimental.pallas import tpu as pltpu


_SQRT_HALF = 0.7071067811865476
_SQRT_2_OVER_PI = 0.7978845608028654


# --------------------------------------------------------------------------
# helpers
# --------------------------------------------------------------------------
def _round_up(a, m):
    return (a + m - 1) // m * m


def _cdiv(a, b):
    return (a + b - 1) // b


def _device_kind():
    try:
        return jax.devices()[0].device_kind.lower()
    except Exception:
        return ""


def _vmem_budget_bytes():
    """~75% of per-TensorCore VMEM (48 MiB-class on v7x, 96 MiB on v5e/v6e)."""
    cap = None
    try:
        cap = int(pltpu.get_tpu_info().vmem_capacity_bytes)
    except Exception:
        cap = None
    if cap is None:
        kind = _device_kind()
        if ("v5" in kind) or ("v6" in kind):
            cap = 128 << 20
        else:
            cap = 64 << 20          # conservative fallback (v7x-safe)
    return int(cap) * 3 // 4


def _gelu(h, approximate):
    if approximate:
        # tanh approximation: transcendental runs on the (otherwise idle) EUP.
        return 0.5 * h * (1.0 + jnp.tanh(
            _SQRT_2_OVER_PI * (h + 0.044715 * h * h * h)))
    # exact erf-based GELU (PyTorch nn.GELU() default)
    return 0.5 * h * (1.0 + lax.erf(h * _SQRT_HALF))


# --------------------------------------------------------------------------
# kernels
# --------------------------------------------------------------------------
def _two_lp_resident_kernel(x_ref, w1t_ref, b1_ref, w2_ref, b2_ref, o_ref, *,
                            approximate):
    """Weights fully VMEM-resident; single pass over the hidden dim."""
    x = x_ref[...]                                                # (tm, d)
    # fc1: x @ W1.T  (W1 stored (hidden, d) -> contiguous slabs in HBM)
    h = lax.dot_general(x, w1t_ref[...], (((1,), (1,)), ((), ())),
                        preferred_element_type=jnp.float32)       # (tm, H)
    h = _gelu(h + b1_ref[...].astype(jnp.float32), approximate)
    out = jnp.dot(h.astype(w2_ref.dtype), w2_ref[...],
                  preferred_element_type=jnp.float32)             # (tm, d)
    o_ref[...] = (out + b2_ref[...].astype(jnp.float32)).astype(o_ref.dtype)


def _two_lp_stream_kernel(x_ref, w1t_ref, b1_ref, w2_ref, b2_ref, o_ref,
                          acc_ref, *, approximate):
    """Hidden dim tiled over grid axis 1; fc2 partials accumulated in f32."""
    k = pl.program_id(1)

    @pl.when(k == 0)
    def _():
        acc_ref[...] = jnp.zeros_like(acc_ref)

    x = x_ref[...]                                                # (tm, d)
    h = lax.dot_general(x, w1t_ref[...], (((1,), (1,)), ((), ())),
                        preferred_element_type=jnp.float32)       # (tm, th)
    b1_tile = b1_ref[pl.ds(k, 1), :]                              # resident bias
    h = _gelu(h + b1_tile.astype(jnp.float32), approximate)
    acc_ref[...] += jnp.dot(h.astype(w2_ref.dtype), w2_ref[...],
                            preferred_element_type=jnp.float32)

    @pl.when(k == pl.num_programs(1) - 1)
    def _():
        o_ref[...] = (acc_ref[...] +
                      b2_ref[...].astype(jnp.float32)).astype(o_ref.dtype)


# --------------------------------------------------------------------------
# host-side wrapper
# --------------------------------------------------------------------------
def two_lp_forward(x, w1, b1, w2, b2, *, tm=1024, th=2048,
                   approximate_gelu=False, mode="auto",
                   vmem_limit_bytes=None):
    """TwoLP forward: fc2(GELU(fc1(x))).

    Shapes:
      x  : (..., d_model)
      w1 : (hidden, d_model)   -- fc1.weight (PyTorch layout); used as x @ w1.T
      b1 : (hidden,) or (1, hidden)
      w2 : (hidden, d_model)   -- fc2.weight.T, stored (in, out)
      b2 : (d_model,) or (1, d_model)

    bf16 inputs/weights run on the bf16 MXU path with f32 accumulation.
    """
    if mode not in ("auto", "resident", "stream"):
        raise ValueError(f"unknown mode: {mode}")

    orig_shape = x.shape
    d_model = orig_shape[-1]
    hidden = w1.shape[0]

    x_flat = x.reshape(-1, d_model)
    N = x_flat.shape[0]

    b1 = b1.reshape(1, hidden)
    b2 = b2.reshape(1, d_model)

    bx = jnp.dtype(x.dtype).itemsize
    bw1 = jnp.dtype(w1.dtype).itemsize
    bw2 = jnp.dtype(w2.dtype).itemsize

    budget = int(vmem_limit_bytes) if vmem_limit_bytes is not None \
        else _vmem_budget_bytes()

    # ---- row tile ----------------------------------------------------------
    tm = max(8, min(_round_up(tm, 8), _round_up(N, 8)))
    # On v7x (2 TensorCores) make sure the "parallel" row axis has >= 2 tiles.
    if "v7" in _device_kind() and _round_up(N, tm) // tm < 2 and N > 8:
        tm = max(8, _round_up(_cdiv(N, 2), 8))

    H128 = _round_up(hidden, 128)

    # ---- VMEM estimates (double-buffered tiles + f32 intermediates) --------
    def resident_bytes(tm_):
        weights = H128 * d_model * (bw1 + bw2) + H128 * 4 + d_model * 4
        io = 2 * tm_ * d_model * bx * 2          # x + out tiles, double-buffered
        interm = 3 * tm_ * H128 * 4              # f32 hidden activations
        return weights + io + interm

    if mode == "resident":
        resident = True
    elif mode == "stream":
        resident = False
    else:
        resident = False
        tm_res = tm
        while True:
            if resident_bytes(tm_res) <= budget:
                resident = True
                tm = tm_res
                break
            if tm_res <= 256:
                break
            tm_res = max(256, _round_up(tm_res // 2, 8))

    kernel_kwargs = dict(approximate=approximate_gelu)

    if resident:
        # Weights are fetched from HBM exactly once (constant index_map).
        H_pad = H128
        if H_pad != hidden:
            w1 = jnp.pad(w1, ((0, H_pad - hidden), (0, 0)))
            w2 = jnp.pad(w2, ((0, H_pad - hidden), (0, 0)))
            b1 = jnp.pad(b1, ((0, 0), (0, H_pad - hidden)))

        N_pad = _round_up(N, tm)
        if N_pad != N:
            x_flat = jnp.pad(x_flat, ((0, N_pad - N), (0, 0)))

        grid = (N_pad // tm,)
        out_flat = pl.pallas_call(
            functools.partial(_two_lp_resident_kernel, **kernel_kwargs),
            out_shape=jax.ShapeDtypeStruct((N_pad, d_model), x.dtype),
            grid_spec=pltpu.PrefetchScalarGridSpec(
                num_scalar_prefetch=0,
                grid=grid,
                in_specs=[
                    pl.BlockSpec((tm, d_model), lambda i: (i, 0)),       # x rows
                    pl.BlockSpec((H_pad, d_model), lambda i: (0, 0)),    # W1 resident
                    pl.BlockSpec((1, H_pad), lambda i: (0, 0)),          # b1 resident
                    pl.BlockSpec((H_pad, d_model), lambda i: (0, 0)),    # W2 resident
                    pl.BlockSpec((1, d_model), lambda i: (0, 0)),        # b2 resident
                ],
                out_specs=pl.BlockSpec((tm, d_model), lambda i: (i, 0)),
            ),
            compiler_params=pltpu.CompilerParams(
                dimension_semantics=("parallel",),
                vmem_limit_bytes=int(budget),
            ),
        )(x_flat, w1, b1, w2, b2)
    else:
        # ---- streaming path: tile the hidden dimension ----------------------
        th = min(max(128, (th // 128) * 128), H128)

        def stream_bytes(tm_, th_):
            wt = 2 * th_ * d_model * (bw1 + bw2)     # double-buffered W tiles
            io = 2 * tm_ * d_model * bx * 2          # x + out tiles
            acc = tm_ * d_model * 4                  # f32 accumulator scratch
            interm = 3 * tm_ * th_ * 4               # f32 hidden activations
            small = H128 * 4 + d_model * 4           # resident biases
            return wt + io + acc + interm + small

        while stream_bytes(tm, th) > budget and th > 128:
            th = max(128, _round_up(th // 2, 128))
        while stream_bytes(tm, th) > budget and tm > 8:
            tm = max(8, _round_up(tm // 2, 8))

        n_k = _cdiv(H128, th)
        H_pad = n_k * th
        if H_pad != hidden:
            w1 = jnp.pad(w1, ((0, H_pad - hidden), (0, 0)))
            w2 = jnp.pad(w2, ((0, H_pad - hidden), (0, 0)))
            b1 = jnp.pad(b1, ((0, 0), (0, H_pad - hidden)))
        b1 = b1.reshape(n_k, th)                     # k-indexed in kernel

        N_pad = _round_up(N, tm)
        if N_pad != N:
            x_flat = jnp.pad(x_flat, ((0, N_pad - N), (0, 0)))

        grid = (N_pad // tm, n_k)
        out_flat = pl.pallas_call(
            functools.partial(_two_lp_stream_kernel, **kernel_kwargs),
            out_shape=jax.ShapeDtypeStruct((N_pad, d_model), x.dtype),
            grid_spec=pltpu.PrefetchScalarGridSpec(
                num_scalar_prefetch=0,
                grid=grid,
                in_specs=[
                    pl.BlockSpec((tm, d_model), lambda i, k: (i, 0)),    # x rows
                    pl.BlockSpec((th, d_model), lambda i, k: (k, 0)),    # W1 row slab
                    pl.BlockSpec((n_k, th), lambda i, k: (0, 0)),        # b1 resident
                    pl.BlockSpec((th, d_model), lambda i, k: (k, 0)),    # W2 row slab
                    pl.BlockSpec((1, d_model), lambda i, k: (0, 0)),     # b2 resident
                ],
                out_specs=pl.BlockSpec((tm, d_model), lambda i, k: (i, 0)),
                scratch_shapes=[pltpu.VMEM((tm, d_model), jnp.float32)],
            ),
            compiler_params=pltpu.CompilerParams(
                dimension_semantics=("parallel", "arbitrary"),
                vmem_limit_bytes=int(budget),
            ),
        )(x_flat, w1, b1, w2, b2)

    if out_flat.shape[0] != N:
        out_flat = out_flat[:N]
    return out_flat.reshape(orig_shape)


# --------------------------------------------------------------------------
# params / reference
# --------------------------------------------------------------------------
def init_params(key, d_model, hidden_dim, dtype=jnp.float32):
    """nn.Linear-style uniform(-1/sqrt(fan_in), 1/sqrt(fan_in)) init.
    Layouts: w1 (hidden, d_model) == fc1.weight; w2 (hidden, d_model) == fc2.weight.T.
    """
    k1, k2, k3, k4 = jax.random.split(key, 4)
    bound1 = 1.0 / (d_model ** 0.5)
    bound2 = 1.0 / (hidden_dim ** 0.5)
    w1 = jax.random.uniform(k1, (hidden_dim, d_model), dtype, -bound1, bound1)
    b1 = jax.random.uniform(k2, (hidden_dim,), dtype, -bound1, bound1)
    w2 = jax.random.uniform(k3, (hidden_dim, d_model), dtype, -bound2, bound2)
    b2 = jax.random.uniform(k4, (d_model,), dtype, -bound2, bound2)
    return w1, b1, w2, b2


def _reference(x, w1, b1, w2, b2):
    h = x @ w1.T + b1
    h = 0.5 * h * (1.0 + lax.erf(h * _SQRT_HALF))
    return h @ w2 + b2


# --------------------------------------------------------------------------
# demo / self-test
# --------------------------------------------------------------------------
if __name__ == "__main__":
    d_model, hidden_dim = 32, 64
    batch, seq = 2, 8

    key = jax.random.PRNGKey(0)
    kx, kp = jax.random.split(key)
    x = jax.random.normal(kx, (batch, seq, d_model), jnp.float32)
    w1, b1, w2, b2 = init_params(kp, d_model, hidden_dim)

    # Resident-weights (auto) path.
    out = jax.block_until_ready(two_lp_forward(x, w1, b1, w2, b2))
    ref = _reference(x.reshape(-1, d_model), w1, b1, w2, b2).reshape(x.shape)
    assert out.shape == x.shape
    assert jnp.allclose(out, ref, atol=5e-5, rtol=5e-5), "mismatch (resident)"

    # Also exercise the streaming (hidden-tiled, accumulator) path.
    d2, h2 = 32, 256
    x2 = jax.random.normal(jax.random.PRNGKey(1), (batch, seq, d2), jnp.float32)
    w1b, b1b, w2b, b2b = init_params(jax.random.PRNGKey(2), d2, h2)
    out2 = jax.block_until_ready(
        two_lp_forward(x2, w1b, b1b, w2b, b2b, mode="stream", th=128))
    ref2 = _reference(x2.reshape(-1, d2), w1b, b1b, w2b, b2b).reshape(x2.shape)
    assert jnp.allclose(out2, ref2, atol=5e-5, rtol=5e-5), "mismatch (stream)"

    print("KERNEL_OK")
</pallas_src>

<mosaic_0001>
module attributes {stable_mosaic.version = 11 : i64} {
  func.func @_two_lp_resident_kernel(%arg0: i32, %arg1: memref<16x32xf32, #tpu.memory_space<vmem>>, %arg2: memref<128x32xf32, #tpu.memory_space<vmem>>, %arg3: memref<1x128xf32, #tpu.memory_space<vmem>>, %arg4: memref<128x32xf32, #tpu.memory_space<vmem>>, %arg5: memref<1x32xf32, #tpu.memory_space<vmem>>, %arg6: memref<16x32xf32, #tpu.memory_space<vmem>>) attributes {dimension_semantics = [#tpu.dimension_semantics<parallel>], iteration_bounds = array<i64: 1>, scalar_prefetch = 0 : i64, scratch_operands = 0 : i64, tpu.core_type = #tpu.core_type<tc>, window_params = [{transform_indices = @transform_0, window_bounds = array<i64: 16, 32>}, {pipeline_mode = #tpu.pipeline_mode<synchronous>, transform_indices = @transform_1, window_bounds = array<i64: 128, 32>}, {pipeline_mode = #tpu.pipeline_mode<synchronous>, transform_indices = @transform_2, window_bounds = array<i64: 1, 128>}, {pipeline_mode = #tpu.pipeline_mode<synchronous>, transform_indices = @transform_3, window_bounds = array<i64: 128, 32>}, {pipeline_mode = #tpu.pipeline_mode<synchronous>, transform_indices = @transform_4, window_bounds = array<i64: 1, 32>}, {transform_indices = @transform_5, window_bounds = array<i64: 16, 32>}]} {
    %c0 = arith.constant 0 : index
    %c0_0 = arith.constant 0 : index
    %0 = vector.load %arg1[%c0, %c0_0] : memref<16x32xf32, #tpu.memory_space<vmem>>, vector<16x32xf32>
    %c0_1 = arith.constant 0 : index
    %c0_2 = arith.constant 0 : index
    %1 = vector.load %arg2[%c0_1, %c0_2] : memref<128x32xf32, #tpu.memory_space<vmem>>, vector<128x32xf32>
    %cst = arith.constant dense<0.000000e+00> : vector<16x128xf32>
    %2 = tpu.matmul %0, %1, %cst {dimension_numbers = #tpu.dot_dimension_numbers<[1], [1], [0], [0], [0, 0, 1, 0], [], []>} : vector<16x32xf32>, vector<128x32xf32>, vector<16x128xf32> -> vector<16x128xf32>
    %c0_3 = arith.constant 0 : index
    %c0_4 = arith.constant 0 : index
    %3 = vector.load %arg3[%c0_3, %c0_4] : memref<1x128xf32, #tpu.memory_space<vmem>>, vector<1x128xf32>
    %4 = vector.broadcast %3 : vector<1x128xf32> to vector<16x128xf32>
    %5 = arith.addf %2, %4 : vector<16x128xf32>
    %cst_5 = arith.constant 5.000000e-01 : f32
    %6 = vector.broadcast %cst_5 : f32 to vector<16x128xf32>
    %7 = arith.mulf %6, %5 : vector<16x128xf32>
    %cst_6 = arith.constant 0.707106769 : f32
    %8 = vector.broadcast %cst_6 : f32 to vector<16x128xf32>
    %9 = arith.mulf %5, %8 : vector<16x128xf32>
    %10 = math.erf %9 : vector<16x128xf32>
    %cst_7 = arith.constant 1.000000e+00 : f32
    %11 = vector.broadcast %cst_7 : f32 to vector<16x128xf32>
    %12 = arith.addf %11, %10 : vector<16x128xf32>
    %13 = arith.mulf %7, %12 : vector<16x128xf32>
    %c0_8 = arith.constant 0 : index
    %c0_9 = arith.constant 0 : index
    %14 = vector.load %arg4[%c0_8, %c0_9] : memref<128x32xf32, #tpu.memory_space<vmem>>, vector<128x32xf32>
    %cst_10 = arith.constant dense<0.000000e+00> : vector<16x32xf32>
    %15 = tpu.matmul %13, %14, %cst_10 {dimension_numbers = #tpu.dot_dimension_numbers<[1], [0], [0], [1], [0, 0, 1, 1], [], []>} : vector<16x128xf32>, vector<128x32xf32>, vector<16x32xf32> -> vector<16x32xf32>
    %c0_11 = arith.constant 0 : index
    %c0_12 = arith.constant 0 : index
    %16 = vector.load %arg5[%c0_11, %c0_12] : memref<1x32xf32, #tpu.memory_space<vmem>>, vector<1x32xf32>
    %17 = vector.broadcast %16 : vector<1x32xf32> to vector<16x32xf32>
    %18 = arith.addf %15, %17 : vector<16x32xf32>
    %c0_13 = arith.constant 0 : index
    %c0_14 = arith.constant 0 : index
    %19 = vector.load %arg6[%c0_13, %c0_14] : memref<16x32xf32, #tpu.memory_space<vmem>>, vector<16x32xf32>
    tpu.vector_store %arg6[%c0_13, %c0_14], %18 {strides = array<i32>} : memref<16x32xf32, #tpu.memory_space<vmem>>, vector<16x32xf32>,
    return
  }
  func.func @transform_0(%arg0: i32) -> (i32, i32) {
    %c0_i32 = arith.constant 0 : i32
    %c0_i32_0 = arith.constant 0 : i32
    return %arg0, %c0_i32 : i32, i32
  }
  func.func @transform_1(%arg0: i32) -> (i32, i32) {
    %c0_i32 = arith.constant 0 : i32
    %c0_i32_0 = arith.constant 0 : i32
    %c0_i32_1 = arith.constant 0 : i32
    return %c0_i32, %c0_i32_0 : i32, i32
  }
  func.func @transform_2(%arg0: i32) -> (i32, i32) {
    %c0_i32 = arith.constant 0 : i32
    %c0_i32_0 = arith.constant 0 : i32
    %c0_i32_1 = arith.constant 0 : i32
    return %c0_i32, %c0_i32_0 : i32, i32
  }
  func.func @transform_3(%arg0: i32) -> (i32, i32) {
    %c0_i32 = arith.constant 0 : i32
    %c0_i32_0 = arith.constant 0 : i32
    %c0_i32_1 = arith.constant 0 : i32
    return %c0_i32, %c0_i32_0 : i32, i32
  }
  func.func @transform_4(%arg0: i32) -> (i32, i32) {
    %c0_i32 = arith.constant 0 : i32
    %c0_i32_0 = arith.constant 0 : i32
    %c0_i32_1 = arith.constant 0 : i32
    return %c0_i32, %c0_i32_0 : i32, i32
  }
  func.func @transform_5(%arg0: i32) -> (i32, i32) {
    %c0_i32 = arith.constant 0 : i32
    %c0_i32_0 = arith.constant 0 : i32
    return %arg0, %c0_i32 : i32, i32
  }
}

</mosaic_0001>

<bundles_post_ra>
// kernel: tpu_custom_call.1
= control target key start
LH: loop header
LB: loop body
LE: loop exit
PB: predicated region body
PF: predicated region fallthrough
CT: control target
= control target key end

     0   :  { %vm46_vm0 = vcmask 261120   ;;  %s734_s0 = inlined_call_operand.vmem [shape: f32[16,32], index: 0, kind: input, shape index: {}]   ;;  %s735_s1 = inlined_call_operand.vmem [shape: f32[128,32], index: 1, kind: input, shape index: {}]   ;;  %s736_s2 = inlined_call_operand.vmem [shape: f32[1,128], index: 2, kind: input, shape index: {}]   ;;  %s737_s3 = inlined_call_operand.vmem [shape: f32[128,32], index: 3, kind: input, shape index: {}]   ;;  %s738_s4 = inlined_call_operand.vmem [shape: f32[1,32], index: 4, kind: input, shape index: {}]   ;;  %s739_s5 = inlined_call_operand.hbm [shape: f32[16,32], index: 5, kind: output, shape index: {}]  }
   0x1   :  { %v23_v0 = vld [vmem:[%s735_s1] sm:$0xff]  ;;  %v24_v1 = vld [vmem:[%s735_s1 + $0x8] sm:$0xff]  ;;  %v25_v2 = vld [vmem:[%s735_s1 + $0x10] sm:$0xff] }
   0x2   :  { %v428_v3 = vpack.c.bf16 %v24_v1, %v23_v0  ;;  %vm583_vm1 = vmpackc.low %vm46_vm0, %vm46_vm0  ;;  %v26_v5 = vld [vmem:[%s735_s1 + $0x18] sm:$0xff]  ;;  %v27_v7 = vld [vmem:[%s735_s1 + $0x20] sm:$0xff] }
   0x3   :  { %v434_v6 = vpack.c.bf16 %v26_v5, %v25_v2  ;;  %v21_v8 = vld [vmem:[%s734_s0] sm:$0xff]  ;;  %v28_v9 = vld [vmem:[%s735_s1 + $0x28] sm:$0xff]  ;;  %v188_v13 = vld [vmem:[%s737_s3 + $0x10] sm:$0xff] }
   0x4   :  { %430 = vmatprep.subr.msk.bf16.mxu0 %vm583_vm1, %v428_v3  ;;  %390 = vmatprep.mubr.msk.f32.mxu0 %vm46_vm0, %v21_v8  ;;  %v186_v10 = vld [vmem:[%s737_s3] sm:$0xff]  ;;  %v187_v11 = vld [vmem:[%s737_s3 + $0x8] sm:$0xff]  ;;  %v189_v14 = vld [vmem:[%s737_s3 + $0x18] sm:$0xff] }
   0x5   :  { %433 = vmatpush3.bf16.xpose.msk.msra.mxu0 %vm583_vm1, %v428_v3  ;;  %v476_v12 = vpack.c.bf16 %v187_v11, %v186_v10  ;;  %v480_v15 = vpack.c.bf16 %v189_v14, %v188_v13  ;;  %v190_v16 = vld [vmem:[%s737_s3 + $0x20] sm:$0xff]  ;;  %v191_v17 = vld [vmem:[%s737_s3 + $0x28] sm:$0xff] }
   0x6   :  { %436 = vmatprep.subr.msk.bf16.mxu0 %vm583_vm1, %v434_v6 }
   0x7   :  { %10 = vsyncpa [#allocation3], 0  ;;  %v440_v18 = vpack.c.bf16 %v28_v9, %v27_v7  ;;  %477 = vmatprep.subr.bf16.mxu1 %v476_v12  ;;  %v484_v19 = vpack.c.bf16 %v191_v17, %v190_v16  ;;  %v29_v20 = vld [vmem:[%s735_s1 + $0x30] sm:$0xff]  ;;  %v30_v21 = vld [vmem:[%s735_s1 + $0x38] sm:$0xff]  ;;  %s539_s11 = smov [#allocation2]  }
   0x8   :  { %479 = vmatpush3.bf16.msra.mxu1 %v476_v12  ;;  %v446_v22 = vpack.c.bf16 %v30_v21, %v29_v20  ;;  %v31_v23 = vld [vmem:[%s735_s1 + $0x40] sm:$0xff]  ;;  %v32_v24 = vld [vmem:[%s735_s1 + $0x48] sm:$0xff]  ;;  %v33_v26 = vld [vmem:[%s735_s1 + $0x50] sm:$0xff]  ;;  %s291_s12 = sshll.u32 %s539_s11, 4  ;;  %s292_s12 = int_to_ptr.vmem [resolvable:$true] %s291_s12 }
   0x9   :  { %481 = vmatprep.subr.bf16.mxu1 %v480_v15  ;;  %v452_v25 = vpack.c.bf16 %v32_v24, %v31_v23  ;;  %v34_v27 = vld [vmem:[%s735_s1 + $0x58] sm:$0xff]  ;;  %v35_v29 = vld [vmem:[%s735_s1 + $0x60] sm:$0xff]  ;;  %v36_v30 = vld [vmem:[%s735_s1 + $0x68] sm:$0xff]  ;;  %s515_s13 = scalar_lea.vmem %s292_s12, 256  ;;  %p520_p1 = scmp.lt.s32.totalorder %s292_s12, %s292_s12 }
   0xa   :  { %v458_v28 = vpack.c.bf16 %v34_v27, %v33_v26  ;;  %v464_v31 = vpack.c.bf16 %v36_v30, %v35_v29  ;;  %v37_v32 = vld [vmem:[%s735_s1 + $0x70] sm:$0xff]  ;;  %v38_v33 = vld [vmem:[%s735_s1 + $0x78] sm:$0xff]  ;;  %v22_v35 = vld [vmem:[%s734_s0 + $0x8] sm:$0xff]  ;;  %p516_p0 = scmp.ne.s32.totalorder %s292_s12, %s515_s13  ;;  %p521_p2 = scmp.lt.s32.totalorder %s515_s13, %s515_s13 }
   0xb   :  { %v470_v34 = vpack.c.bf16 %v38_v33, %v37_v32  ;;  %v192_v36 = vld [vmem:[%s737_s3 + $0x30] sm:$0xff]  ;;  %v193_v37 = vld [vmem:[%s737_s3 + $0x38] sm:$0xff]  ;;  %v194_v39 = vld [vmem:[%s737_s3 + $0x40] sm:$0xff] }
   0xc   :  { %483 = vmatpush3.bf16.msra.mxu1 %v480_v15  ;;  %v488_v38 = vpack.c.bf16 %v193_v37, %v192_v36  ;;  %v195_v40 = vld [vmem:[%s737_s3 + $0x48] sm:$0xff]  ;;  %v196_v42 = vld [vmem:[%s737_s3 + $0x50] sm:$0xff]  ;;  %v197_v43 = vld [vmem:[%s737_s3 + $0x58] sm:$0xff]  ;;  %p522_p3 = por %p521_p2, %p520_p1 }
   0xd   :  { %439 = vmatpush3.bf16.xpose.msk.msra.mxu0 %vm583_vm1, %v434_v6  ;;  %485 = vmatprep.subr.bf16.mxu1 %v484_v19  ;;  %v492_v41 = vpack.c.bf16 %v195_v40, %v194_v39  ;;  %v496_v44 = vpack.c.bf16 %v197_v43, %v196_v42  ;;  %v198_v45 = vld [vmem:[%s737_s3 + $0x60] sm:$0xff]  ;;  %v199_v46 = vld [vmem:[%s737_s3 + $0x68] sm:$0xff]  ;;  %v200_v48 = vld [vmem:[%s737_s3 + $0x70] sm:$0xff] }
   0xe   :  { %442 = vmatprep.subr.msk.bf16.mxu0 %vm583_vm1, %v440_v18  ;;  %v500_v47 = vpack.c.bf16 %v199_v46, %v198_v45  ;;  %v201_v49 = vld [vmem:[%s737_s3 + $0x78] sm:$0xff]  ;;  %v302_v51 = vld [vmem:[%s736_s2] ss:$0 sm:$0xff]  ;;  %p523_p4 = pnand %p522_p3, %p516_p0 }
   0xf   :  { %v504_v50 = vpack.c.bf16 %v201_v49, %v200_v48  ;;  %v321_v2 = vld [vmem:[%s738_s4] ss:$0 sm:$0xff] }
  0x10   :  { %487 = vmatpush3.bf16.msra.mxu1 %v484_v19 }
  0x11   :  { %489 = vmatprep.subr.bf16.mxu1 %v488_v38 }
  0x14   :  { %491 = vmatpush3.bf16.msra.mxu1 %v488_v38 }
  0x15   :  { %445 = vmatpush3.bf16.xpose.msk.msra.mxu0 %vm583_vm1, %v440_v18  ;;  %493 = vmatprep.subr.bf16.mxu1 %v492_v41 }
  0x16   :  { %448 = vmatprep.subr.msk.bf16.mxu0 %vm583_vm1, %v446_v22 }
  0x18   :  { %495 = vmatpush3.bf16.msra.mxu1 %v492_v41 }
  0x19   :  { %497 = vmatprep.subr.bf16.mxu1 %v496_v44 }
  0x1c   :  { %499 = vmatpush3.bf16.msra.mxu1 %v496_v44 }
  0x1d   :  { %451 = vmatpush3.bf16.xpose.msk.msra.mxu0 %vm583_vm1, %v446_v22  ;;  %501 = vmatprep.subr.bf16.mxu1 %v500_v47 }
  0x1e   :  { %454 = vmatprep.subr.msk.bf16.mxu0 %vm583_vm1, %v452_v25 }
  0x20   :  { %503 = vmatpush3.bf16.msra.mxu1 %v500_v47 }
  0x21   :  { %505 = vmatprep.subr.bf16.mxu1 %v504_v50 }
  0x24   :  { %507 = vmatpush3.bf16.msra.mxu1 %v504_v50 }
  0x25   :  { %457 = vmatpush3.bf16.xpose.msk.msra.mxu0 %vm583_vm1, %v452_v25 }
  0x26   :  { %460 = vmatprep.subr.msk.bf16.mxu0 %vm583_vm1, %v458_v28 }
  0x2d   :  { %463 = vmatpush3.bf16.xpose.msk.msra.mxu0 %vm583_vm1, %v458_v28 }
  0x2e   :  { %466 = vmatprep.subr.msk.bf16.mxu0 %vm583_vm1, %v464_v31 }
  0x35   :  { %469 = vmatpush3.bf16.xpose.msk.msra.mxu0 %vm583_vm1, %v464_v31 }
  0x36   :  { %472 = vmatprep.subr.msk.bf16.mxu0 %vm583_vm1, %v470_v34 }
  0x3d   :  { %475 = vmatpush3.bf16.xpose.msk.msra.mxu0 %vm583_vm1, %v470_v34 }
  0x44   :  { %391 = vmatmul.mubr.msk.f32.vlgmr.msra.gmra.mrb[0].mxu0 %vm46_vm0, %v22_v35 }
 0x117   :  { %v392_v52 = vpop.f32.mrb[0].mxu0 }
 0x118   :  { %v173_v53 = vadd.f32 %v392_v52, %v302_v51  ;;  %v167_v54 = vpop.f32.mrb[1].mxu0 }
 0x119   :  { %v168_v55 = vadd.f32 %v302_v51, %v167_v54 }
 0x11a   :  { %v179_v56 = vmul.f32 0.70710677, %v173_v53  ;;  %v177_v63 = vmul.f32 0.5, %v173_v53 }
 0x11b   :  { %v178_v57 = vmul.f32 0.70710677, %v168_v55  ;;  %v176_v61 = vmul.f32 0.5, %v168_v55 }
 0x11c   :  { %511 = verf.f32 %v179_v56 }
 0x11d   :  { %513 = verf.f32 %v178_v57 }
 0x126   :  { %v512_v58 = vpop.eup %511 }
 0x127   :  { %v514_v59 = vpop.eup %513  ;;  %v183_v60 = vadd.f32 1.0, %v512_v58 }
 0x128   :  { %v182_v62 = vadd.f32 1.0, %v514_v59 }
 0x129   :  { %v185_v1 = vmul.f32 %v183_v60, %v177_v63 }
 0x12a   :  { %v184_v0 = vmul.f32 %v182_v62, %v176_v61 }
 0x12c   :  { %425 = vmatprep.mubr.f32.mxu1 %v184_v0 }
 0x12d   :  { %426 = vmatmul.mubr.f32.vlgmr.msra.gmra.mrb[0].mxu1 %v185_v1 }
 0x200   :  { %v427_v3 = vpop.f32.mrb[0].mxu1 }
 0x201   :  { %v281_v4 = vadd.f32 %v427_v3, %v321_v2  ;;  %v275_v5 = vpop.f32.mrb[1].mxu1 }
 0x202   :  { %v276_v6 = vadd.f32 %v321_v2, %v275_v5 }
 0x203   :  { %285 = vst.msk [vmem:[#allocation2 + $0x8] sm:$0xff] %vm46_vm0, %v281_v4 }
 0x204   :  { %284 = vst.msk [vmem:[#allocation2] sm:$0xff] %vm46_vm0, %v276_v6 }
 0x205   :  { %526 = shalt.err (!%p523_p4)
}
 0x206   :  { %s527_s15 = scalar_lea.hbm %s739_s5, 256 }
 0x207   :  { %p528_p5 = scmp.ne.s32.totalorder %s739_s5, %s527_s15  ;;  %p531_p6 = scmp.lt.u32.totalorder %s527_s15, %s739_s5 }
 0x209   :  { %p533_p7 = pnand %p531_p6, %p528_p5 }
 0x20b   :  { %536 = shalt.err (!%p533_p7)
}
 0x20c   :  { %s540_s19 = smov 128   ;;  %s541_s20 = smov 8  }
 0x20d   :  { %297 = dma.vmem_to_hbm [thread:$0]  %s292_s12, 256, %s739_s5, [#allocation3], %s540_s19, %s540_s19, %s541_s20  }
 0x20e   :  { %537 = dma.done.wait [#allocation3], 256  }
 0x20f   :  { %538 = vsyncadd [#allocation3], 4294967040 }
 0x210   :  { %301 = vsyncpa [#allocation3], 1 }

</bundles_post_ra>
